<compile_context>
chip_gen: v5e
topology: v5e:2x2
jax: 0.10.0
libtpu: 0.0.40
codegen_flags: <defaults>
</compile_context>

<pallas_src>
import math

import jax
import jax.numpy as jnp
from jax.experimental import pallas as pl
from jax.experimental.pallas import tpu as pltpu


def _proj_kernel(x_ref, w_ref, add_ref, o_ref):
    # x_ref:   (TILE_M, Din)  bf16 patch rows (flattened over b, t, n)
    # w_ref:   (Din, E)       bf16 projection weight (resident across grid)
    # add_ref: (TILE_M, E)    f32 bias + temporal embedding, periodic rows (resident)
    # o_ref:   (TILE_M, E)    output tile
    acc = jnp.dot(x_ref[...], w_ref[...], preferred_element_type=jnp.float32)
    o_ref[...] = (acc + add_ref[...]).astype(o_ref.dtype)


def image_tokenizer_forward(x, w, b, temb, patch_size, *,
                            compute_dtype=jnp.bfloat16,
                            target_rows=1024):
    """Octo ImageTokenizer forward.

    x:    (B, T, C, H, W) images
    w:    (Din, E) projection weight, Din = p*p*C (transposed vs torch (out,in))
    b:    (E,) projection bias
    temb: (1, T, 1, E) temporal embedding
    returns (B, T, N, E) with N = (H//p)*(W//p)
    """
    B, T, C, H, W = x.shape
    p = patch_size
    assert H % p == 0 and W % p == 0
    N = (H // p) * (W // p)
    Din = p * p * C
    E = w.shape[1]
    assert w.shape == (Din, E)

    # ---- patchify (layout glue; cast first so the materialized pass is bf16) ----
    xb = x.astype(compute_dtype)
    xp = xb.reshape(B * T, C, H // p, p, W // p, p)
    xp = jnp.transpose(xp, (0, 2, 4, 3, 5, 1))              # (BT, H/p, W/p, p, p, C)
    xp = xp.reshape(B * T * N, Din)                          # rows: b-major, then t, then n

    # ---- fused additive operand: bias + temporal embedding per (t, n) row ----
    add_tn = (temb.reshape(T, 1, E).astype(jnp.float32)
              + b.reshape(1, 1, E).astype(jnp.float32))      # (T, 1, E)
    add_tn = jnp.broadcast_to(add_tn, (T, N, E)).reshape(T * N, E)

    # ---- tile sizing: TILE_M = gb * (T*N) rows ----
    rows_per_b = T * N
    sub = 16 if compute_dtype == jnp.bfloat16 else 8         # sublane granularity of x tile
    step = sub // math.gcd(rows_per_b, sub)                  # gb must be a multiple of this
    in_bytes = jnp.dtype(compute_dtype).itemsize

    def vmem_est(g):
        tm = g * rows_per_b
        return (2 * tm * Din * in_bytes        # x tiles (double buffered)
                + 2 * tm * E * 4               # out tiles (double buffered, f32)
                + tm * E * 4                   # resident additive slab
                + Din * E * in_bytes)          # resident weight

    gb = max(step, (max(target_rows // rows_per_b, 1) // step) * step)
    gb = min(gb, pl.cdiv(B, step) * step)                    # no bigger than (padded) B
    if pl.cdiv(B, gb) < 2 and B > step:                      # keep >=2 grid steps (v7x: 2 TCs)
        gb = max(step, ((B // 2) // step) * step)
    while gb > step and vmem_est(gb) > 20 * 1024 * 1024:     # leave VMEM headroom (v7x: 64 MiB)
        gb -= step

    tile_m = gb * rows_per_b
    b_pad = pl.cdiv(B, gb) * gb
    m_pad = b_pad * rows_per_b
    if m_pad > B * rows_per_b:
        xp = jnp.pad(xp, ((0, m_pad - B * rows_per_b), (0, 0)))

    add_tile = jnp.tile(add_tn, (gb, 1))                     # (tile_m, E), row pattern periodic

    out = pl.pallas_call(
        _proj_kernel,
        out_shape=jax.ShapeDtypeStruct((m_pad, E), x.dtype),
        grid=(m_pad // tile_m,),
        in_specs=[
            pl.BlockSpec((tile_m, Din), lambda i: (i, 0)),
            pl.BlockSpec((Din, E), lambda i: (0, 0)),
            pl.BlockSpec((tile_m, E), lambda i: (0, 0)),
        ],
        out_specs=pl.BlockSpec((tile_m, E), lambda i: (i, 0)),
        compiler_params=pltpu.CompilerParams(
            dimension_semantics=("parallel",),
            vmem_limit_bytes=32 * 1024 * 1024),
    )(xp, w.astype(compute_dtype), add_tile)

    return out[: B * rows_per_b].reshape(B, T, N, E)


if __name__ == "__main__":
    # Small config consistent with the module: obs_horizon=2, patch_size=8,
    # C=3 (projection in-dim is p*p*3); n_embd=128 keeps the output lane-dense.
    B, T, C = 2, 2, 3
    image_size, patch_size, n_embd = 16, 8, 128
    Din = patch_size * patch_size * C
    N = (image_size // patch_size) ** 2

    key = jax.random.PRNGKey(0)
    kx, kw, kb, kt = jax.random.split(key, 4)
    x = jax.random.normal(kx, (B, T, C, image_size, image_size), jnp.float32)
    w = jax.random.normal(kw, (Din, n_embd), jnp.float32) * (1.0 / Din ** 0.5)
    b = jax.random.normal(kb, (n_embd,), jnp.float32) * 0.01
    temb = jax.random.normal(kt, (1, T, 1, n_embd), jnp.float32)

    out = jax.block_until_ready(image_tokenizer_forward(x, w, b, temb, patch_size))
    assert out.shape == (B, T, N, n_embd)

    # Reference with the same bf16-rounded operands (kernel accumulates in f32).
    xb = x.astype(jnp.bfloat16).astype(jnp.float32)
    wb = w.astype(jnp.bfloat16).astype(jnp.float32)
    xpr = xb.reshape(B * T, C, image_size // patch_size, patch_size,
                     image_size // patch_size, patch_size)
    xpr = jnp.transpose(xpr, (0, 2, 4, 3, 5, 1)).reshape(B * T, N, Din)
    ref = jnp.einsum("mnd,de->mne", xpr, wb,
                     precision=jax.lax.Precision.HIGHEST) + b
    ref = ref.reshape(B, T, N, n_embd) + temb
    assert jnp.allclose(out, ref, atol=1e-3, rtol=1e-3), \
        float(jnp.max(jnp.abs(out - ref)))

    print("KERNEL_OK")
</pallas_src>

<mosaic_0001>
module attributes {stable_mosaic.version = 11 : i64} {
  func.func @_proj_kernel(%arg0: i32, %arg1: memref<16x192xbf16, #tpu.memory_space<vmem>>, %arg2: memref<192x128xbf16, #tpu.memory_space<vmem>>, %arg3: memref<16x128xf32, #tpu.memory_space<vmem>>, %arg4: memref<16x128xf32, #tpu.memory_space<vmem>>) attributes {dimension_semantics = [#tpu.dimension_semantics<parallel>], iteration_bounds = array<i64: 1>, scalar_prefetch = 0 : i64, scratch_operands = 0 : i64, tpu.core_type = #tpu.core_type<tc>, window_params = [{transform_indices = @transform_0, window_bounds = array<i64: 16, 192>}, {pipeline_mode = #tpu.pipeline_mode<synchronous>, transform_indices = @transform_1, window_bounds = array<i64: 192, 128>}, {pipeline_mode = #tpu.pipeline_mode<synchronous>, transform_indices = @transform_2, window_bounds = array<i64: 16, 128>}, {transform_indices = @transform_3, window_bounds = array<i64: 16, 128>}]} {
    %c0 = arith.constant 0 : index
    %c0_0 = arith.constant 0 : index
    %0 = vector.load %arg1[%c0, %c0_0] : memref<16x192xbf16, #tpu.memory_space<vmem>>, vector<16x192xbf16>
    %c0_1 = arith.constant 0 : index
    %c0_2 = arith.constant 0 : index
    %1 = vector.load %arg2[%c0_1, %c0_2] : memref<192x128xbf16, #tpu.memory_space<vmem>>, vector<192x128xbf16>
    %cst = arith.constant dense<0.000000e+00> : vector<16x128xf32>
    %2 = tpu.matmul %0, %1, %cst {dimension_numbers = #tpu.dot_dimension_numbers<[1], [0], [0], [1], [0, 0, 1, 1], [], []>} : vector<16x192xbf16>, vector<192x128xbf16>, vector<16x128xf32> -> vector<16x128xf32>
    %c0_3 = arith.constant 0 : index
    %c0_4 = arith.constant 0 : index
    %3 = vector.load %arg3[%c0_3, %c0_4] : memref<16x128xf32, #tpu.memory_space<vmem>>, vector<16x128xf32>
    %4 = arith.addf %2, %3 : vector<16x128xf32>
    %c0_5 = arith.constant 0 : index
    %c0_6 = arith.constant 0 : index
    %5 = vector.load %arg4[%c0_5, %c0_6] : memref<16x128xf32, #tpu.memory_space<vmem>>, vector<16x128xf32>
    tpu.vector_store %arg4[%c0_5, %c0_6], %4 {strides = array<i32>} : memref<16x128xf32, #tpu.memory_space<vmem>>, vector<16x128xf32>,
    return
  }
  func.func @transform_0(%arg0: i32) -> (i32, i32) {
    %c0_i32 = arith.constant 0 : i32
    %c0_i32_0 = arith.constant 0 : i32
    return %arg0, %c0_i32 : i32, i32
  }
  func.func @transform_1(%arg0: i32) -> (i32, i32) {
    %c0_i32 = arith.constant 0 : i32
    %c0_i32_0 = arith.constant 0 : i32
    %c0_i32_1 = arith.constant 0 : i32
    return %c0_i32, %c0_i32_0 : i32, i32
  }
  func.func @transform_2(%arg0: i32) -> (i32, i32) {
    %c0_i32 = arith.constant 0 : i32
    %c0_i32_0 = arith.constant 0 : i32
    %c0_i32_1 = arith.constant 0 : i32
    return %c0_i32, %c0_i32_0 : i32, i32
  }
  func.func @transform_3(%arg0: i32) -> (i32, i32) {
    %c0_i32 = arith.constant 0 : i32
    %c0_i32_0 = arith.constant 0 : i32
    return %arg0, %c0_i32 : i32, i32
  }
}

</mosaic_0001>

<bundles_post_ra>
// kernel: tpu_custom_call.1
= control target key start
LH: loop header
LB: loop body
LE: loop exit
PB: predicated region body
PF: predicated region fallthrough
CT: control target
= control target key end

     0   :  { %8 = vsyncpa [#allocation3], 0  ;;  %s456_s0 = inlined_call_operand.hbm [shape: bf16[16,192], index: 0, kind: input, shape index: {}]   ;;  %s457_s1 = inlined_call_operand.hbm [shape: bf16[192,128], index: 1, kind: input, shape index: {}]   ;;  %s458_s2 = inlined_call_operand.hbm [shape: f32[16,128], index: 2, kind: input, shape index: {}]   ;;  %s459_s3 = inlined_call_operand.hbm [shape: f32[16,128], index: 3, kind: output, shape index: {}]  }
   0x1   :  { %9 = vsyncpa [#allocation6], 0  ;;  %s28_s14 = sshll.u32 %s457_s1, 4  ;;  %s29_s14 = int_to_ptr.hbm [resolvable:$true] %s28_s14 }
   0x2   :  { %10 = vsyncpa [#allocation4], 0  ;;  %s407_s15 = smov [#allocation5]   ;;  %s15_s19 = sshll.u32 %s456_s0, 4  ;;  %s16_s19 = int_to_ptr.hbm [resolvable:$true] %s15_s19 }
   0x3   :  { %s30_s16 = sshll.u32 %s407_s15, 4  ;;  %s408_s20 = smov 64   ;;  %s31_s16 = int_to_ptr.vmem [resolvable:$true] %s30_s16 }
   0x4   :  { %s409_s21 = smov 4   ;;  %s410_s22 = smov [#allocation2]  }
   0x5   :  { %36 = dma.hbm_to_vmem [thread:$0]  %s29_s14, 1536, %s31_s16, [#allocation6], %s408_s20, %s408_s20, %s409_s21  }
   0x6   :  { %s17_s23 = sshll.u32 %s410_s22, 4  ;;  %s411_s24 = smov 128   ;;  %s18_s23 = int_to_ptr.vmem [resolvable:$true] %s17_s23 }
   0x7   :  { %s412_s25 = smov 8   ;;  %s41_s27 = sshll.u32 %s458_s2, 4  ;;  %s42_s27 = int_to_ptr.hbm [resolvable:$true] %s41_s27 }
   0x8   :  { %23 = dma.hbm_to_vmem [thread:$0]  %s16_s19, 256, %s18_s23, [#allocation3], %s411_s24, %s411_s24, %s412_s25  }
   0x9   :  { %s413_s28 = smov [#allocation7]  }
   0xa   :  { %s43_s0 = sshll.u32 %s413_s28, 4  ;;  %s44_s0 = int_to_ptr.vmem [resolvable:$true] %s43_s0 }
   0xb   :  { %49 = dma.hbm_to_vmem [thread:$0]  %s42_s27, 256, %s44_s0, [#allocation6], %s411_s24, %s411_s24, %s412_s25  }
   0xc   :  { %401 = dma.done.wait [#allocation3], 256  }
   0xd   :  { %402 = vsyncadd [#allocation3], 4294967040 }
   0xe   :  { %403 = dma.done.wait [#allocation6], 1792  }
   0xf   :  { %404 = vsyncadd [#allocation6], 4294965504  ;;  %v292_v0 = vld [vmem:[#allocation5 + $0x38] sm:$0xff]  ;;  %v291_v2 = vld [vmem:[#allocation5 + $0x30] sm:$0xff]  ;;  %vm172_vm0 = vcmask 523264   ;;  %s414_s2 = smov [#allocation8]  }
  0x10   :  { %v296_v1 = vld [vmem:[#allocation5 + $0x58] sm:$0xff]  ;;  %176 = vmatpush.bf16.msra.mxu0 %v292_v0  ;;  %v295_v3 = vld [vmem:[#allocation5 + $0x50] sm:$0xff]  ;;  %v290_v4 = vld [vmem:[#allocation5 + $0x28] sm:$0xff]  ;;  %s210_s29 = sshll.u32 %s414_s2, 4  ;;  %s212_s5 = sshll.u32 %s459_s3, 4  ;;  %s211_s29 = int_to_ptr.vmem [resolvable:$true] %s210_s29  ;;  %s213_s5 = int_to_ptr.hbm [resolvable:$true] %s212_s5 }
  0x11   :  { %194 = vmatpush.bf16.msra.mxu1 %v296_v1  ;;  %v294_v5 = vld [vmem:[#allocation5 + $0x48] sm:$0xff]  ;;  %v289_v6 = vld [vmem:[#allocation5 + $0x20] sm:$0xff]  ;;  %v283_v8 = vld [vmem:[#allocation2 + $0x4] sm:$0xf] }
  0x12   :  { %v293_v7 = vld [vmem:[#allocation5 + $0x40] sm:$0xff]  ;;  %v230_v9 = vld [vmem:[#allocation2 + $0x8] sm:$0xf0]  ;;  %v287_v12 = vld [vmem:[#allocation5 + $0x10] sm:$0xff] }
  0x13   :  { %v288_v10 = vld [vmem:[#allocation5 + $0x18] sm:$0xff]  ;;  %v233_v11 = vor.u32 %v283_v8, %v230_v9  ;;  %v286_v13 = vld [vmem:[#allocation5 + $0x8] sm:$0xff]  ;;  %v285_v14 = vld [vmem:[#allocation5] sm:$0xff] }
  0x14   :  { %177 = vmatpush.bf16.msra.mxu0 %v291_v2  ;;  %v228_v15 = vld [vmem:[#allocation2] sm:$0xf]  ;;  %v284_v16 = vld [vmem:[#allocation2 + $0x4] sm:$0xf0]  ;;  %v89_v18 = vld [vmem:[#allocation7] sm:$0xff] }
  0x15   :  { %195 = vmatpush.bf16.msra.mxu1 %v295_v3  ;;  %v229_v17 = vor.u32 %v284_v16, %v228_v15  ;;  %v90_v23 = vld [vmem:[#allocation7 + $0x8] sm:$0xff] }
  0x18   :  { %178 = vmatpush.bf16.msra.mxu0 %v290_v4 }
  0x19   :  { %196 = vmatpush.bf16.msra.mxu1 %v294_v5 }
  0x1c   :  { %179 = vmatpush.bf16.msra.mxu0 %v289_v6 }
  0x1d   :  { %197 = vmatpush.bf16.msra.mxu1 %v293_v7 }
  0x20   :  { %180 = vmatpush.bf16.msra.mxu0 %v288_v10  ;;  %282 = vmatmul.msk.bf16.vlgmr.msra.gmra.mxu1 %vm172_vm0, %v233_v11 }
  0x24   :  { %181 = vmatpush.bf16.msra.mxu0 %v287_v12 }
  0x28   :  { %182 = vmatpush.bf16.msra.mxu0 %v286_v13 }
  0x2c   :  { %183 = vmatpush.bf16.msra.mxu0 %v285_v14 }
  0x2f   :  { %184 = vmatmul.bf16.vlgmr.msra.gmra.mxu0 %v229_v17 }
  0x9d   :  { %v199_v19 = vpop.f32.mrf.mxu1 }
  0xa5   :  { %v201_v26 = vpop.f32.mrf.mxu1 }
  0xac   :  { %v185_v20 = vpop.f32.mrf.mxu0 }
  0xad   :  { %v186_v21 = vadd.f32 %v185_v20, %v89_v18 }
  0xaf   :  { %v200_v22 = vadd.f32 %v199_v19, %v186_v21 }
  0xb1   :  { %204 = vst [vmem:[#allocation8] sm:$0xff] %v200_v22 }
  0xb4   :  { %v187_v24 = vpop.f32.mrf.mxu0 }
  0xb5   :  { %v188_v25 = vadd.f32 %v187_v24, %v90_v23 }
  0xb7   :  { %v202_v27 = vadd.f32 %v201_v26, %v188_v25 }
  0xb9   :  { %205 = vst [vmem:[#allocation8 + $0x8] sm:$0xff] %v202_v27 }
  0xba   :  { %218 = dma.vmem_to_hbm [thread:$0]  %s211_s29, 256, %s213_s5, [#allocation4], %s411_s24, %s411_s24, %s412_s25  }
  0xbb   :  { %405 = dma.done.wait [#allocation4], 256  }
  0xbc   :  { %406 = vsyncadd [#allocation4], 4294967040 }
  0xbd   :  { %223 = vsyncpa [#allocation3], 1 }
  0xbe   :  { %224 = vsyncpa [#allocation6], 1 }
  0xbf   :  { %225 = vsyncpa [#allocation4], 1 }

</bundles_post_ra>
